<compile_context>
chip_gen: v7x
topology: tpu7x:2x2x1
jax: 0.10.0
libtpu: 0.0.40
codegen_flags: <defaults>
</compile_context>

<pallas_src>
import numpy as np
import jax
import jax.numpy as jnp
from jax.experimental import pallas as pl
from jax.experimental.pallas import tpu as pltpu


def _round_up(x, m):
    return (x + m - 1) // m * m


def _act(x, kind):
    if kind == 'relu':
        return jnp.maximum(x, 0.0)
    if kind == 'tanh':
        return jnp.tanh(x)
    if kind == 'leakyrelu':
        return jnp.where(x >= 0, x, 0.01 * x)
    raise ValueError(f'Unavailable activation: {kind}')


def _make_block_kernel(T, Cp, Coutp, K, dilation, has_downsample, activation):
    pad = (K - 1) * dilation
    off = _round_up(pad, 8) if pad > 0 else 0  # 8-aligned start of real data in scratch

    def kernel(x_ref, w1_ref, b1_ref, w2_ref, b2_ref, *rest):
        if has_downsample:
            wd_ref, bd_ref, o_ref, xpad_sc, a1pad_sc = rest
        else:
            o_ref, xpad_sc, a1pad_sc = rest

        x_f32 = x_ref[...]                         # (T, Cp) f32
        x_bf = x_f32.astype(jnp.bfloat16)          # matmul operand dtype

        # Causal left pad lives in VMEM scratch.  Zero the small prefix every
        # iteration: it is a few KB of 8-aligned stores and keeps the kernel
        # correct when the "parallel" batch axis is sharded across TensorCores
        # (each core has its own scratch).
        if off > 0:
            xpad_sc[:off, :] = jnp.zeros((off, Cp), xpad_sc.dtype)
            a1pad_sc[:off, :] = jnp.zeros((off, Coutp), a1pad_sc.dtype)
        xpad_sc[off:, :] = x_bf

        def dilated_conv(src_sc, w_ref, b_ref):
            # Gather the K dilated taps into one lane-stacked (T, K*C) matrix
            # -> a single MXU matmul against the (K*C, Coutp) stacked weights.
            taps = [src_sc[off - pad + j * dilation: off - pad + j * dilation + T, :]
                    for j in range(K)]
            xcat = taps[0] if K == 1 else jnp.concatenate(taps, axis=-1)
            return jnp.dot(xcat, w_ref[...],
                           preferred_element_type=jnp.float32) + b_ref[...]

        # --- conv1 + act ---
        a1 = _act(dilated_conv(xpad_sc, w1_ref, b1_ref), activation)
        # TODO(synk): nn.Dropout is stochastic in train mode; modeled as identity (eval).

        # --- conv2 on left-padded activations + act ---
        a1pad_sc[off:, :] = a1.astype(jnp.bfloat16)
        a2 = _act(dilated_conv(a1pad_sc, w2_ref, b2_ref), activation)

        # --- residual (optional 1x1 conv downsample, f32 add) + final act ---
        if has_downsample:
            res = jnp.dot(x_bf, wd_ref[...],
                          preferred_element_type=jnp.float32) + bd_ref[...]
        else:
            res = x_f32
        o_ref[...] = _act(a2 + res, activation).astype(o_ref.dtype)

    return kernel, off


def temporal_block(x_btc, block_params, dilation, activation):
    """One fused TemporalBlock.  x_btc: (B, T, Cp) f32 -> (B, T, Coutp) f32."""
    B, T, Cp = x_btc.shape
    w1s, b1, w2s, b2, wd, bd = block_params
    Coutp = w1s.shape[1]
    K = w1s.shape[0] // Cp
    has_downsample = wd is not None
    kernel, off = _make_block_kernel(T, Cp, Coutp, K, dilation,
                                     has_downsample, activation)

    in_arrays = [x_btc, w1s, b1, w2s, b2]
    in_specs = [
        pl.BlockSpec((None, T, Cp), lambda b: (b, 0, 0)),       # x (unpadded)
        pl.BlockSpec((K * Cp, Coutp), lambda b: (0, 0)),        # stacked conv1 weights (bf16)
        pl.BlockSpec((1, Coutp), lambda b: (0, 0)),             # conv1 bias (f32)
        pl.BlockSpec((K * Coutp, Coutp), lambda b: (0, 0)),     # stacked conv2 weights (bf16)
        pl.BlockSpec((1, Coutp), lambda b: (0, 0)),             # conv2 bias (f32)
    ]
    if has_downsample:
        in_arrays += [wd, bd]
        in_specs += [
            pl.BlockSpec((Cp, Coutp), lambda b: (0, 0)),        # 1x1 downsample (bf16)
            pl.BlockSpec((1, Coutp), lambda b: (0, 0)),
        ]

    out = pl.pallas_call(
        kernel,
        out_shape=jax.ShapeDtypeStruct((B, T, Coutp), jnp.float32),
        grid=(B,),
        in_specs=in_specs,
        out_specs=pl.BlockSpec((None, T, Coutp), lambda b: (b, 0, 0)),
        scratch_shapes=[pltpu.VMEM((off + T, Cp), jnp.bfloat16),      # causally padded x
                        pltpu.VMEM((off + T, Coutp), jnp.bfloat16)],  # causally padded a1
        compiler_params=pltpu.CompilerParams(
            dimension_semantics=("parallel",),        # shard batch across TCs on v7x
            vmem_limit_bytes=32 * 1024 * 1024),
    )(*in_arrays)
    return out


# ---------------------- parameters (deterministic init) ----------------------

def _wn_effective(v, g):
    # PyTorch weight_norm(dim=0): w = g * v / ||v||, norm over all dims but 0.
    norm = jnp.sqrt(jnp.sum(v * v, axis=(1, 2), keepdims=True))
    return (g[:, None, None] / norm) * v


def init_tcn_params(key, num_inputs, num_channels, kernel_size):
    params = []
    for i, out_ch in enumerate(num_channels):
        in_ch = num_inputs if i == 0 else num_channels[i - 1]
        key, k1, k2, k3, k4, k5, k6 = jax.random.split(key, 7)
        v1 = 0.01 * jax.random.normal(k1, (out_ch, in_ch, kernel_size), jnp.float32)
        g1 = jnp.sqrt(jnp.sum(v1 * v1, axis=(1, 2)))
        b1 = 0.05 * jax.random.normal(k2, (out_ch,), jnp.float32)
        v2 = 0.01 * jax.random.normal(k3, (out_ch, out_ch, kernel_size), jnp.float32)
        g2 = jnp.sqrt(jnp.sum(v2 * v2, axis=(1, 2)))
        b2 = 0.05 * jax.random.normal(k4, (out_ch,), jnp.float32)
        if in_ch != out_ch:
            wd = 0.01 * jax.random.normal(k5, (out_ch, in_ch, 1), jnp.float32)
            bd = 0.05 * jax.random.normal(k6, (out_ch,), jnp.float32)
        else:
            wd, bd = None, None
        params.append(dict(v1=v1, g1=g1, b1=b1, v2=v2, g2=g2, b2=b2, wd=wd, bd=bd))
    return params


def _prep_block_params(p):
    """weight_norm + lane-pad to multiples of 128 + stack the K taps.

    Returns stacked weights (K*Cin_p, Cout_p) bf16 so each conv is one matmul:
    row block j holds the weights of kernel tap j (time offset j*dilation).
    """
    Cout, Cin, K = p['v1'].shape
    Cp = _round_up(Cin, 128)
    Coutp = _round_up(Cout, 128)
    w1 = _wn_effective(p['v1'], p['g1'])       # (Cout, Cin, K)  PyTorch layout
    w2 = _wn_effective(p['v2'], p['g2'])       # (Cout, Cout, K)

    def stack(w, cin, cin_p):
        wk = jnp.transpose(w, (2, 1, 0))       # (K, Cin, Cout)
        wk = jnp.pad(wk, ((0, 0), (0, cin_p - cin), (0, Coutp - Cout)))
        return wk.reshape(K * cin_p, Coutp).astype(jnp.bfloat16)

    w1s = stack(w1, Cin, Cp)
    w2s = stack(w2, Cout, Coutp)
    b1 = jnp.pad(p['b1'], (0, Coutp - Cout))[None, :].astype(jnp.float32)
    b2 = jnp.pad(p['b2'], (0, Coutp - Cout))[None, :].astype(jnp.float32)
    if p['wd'] is not None:
        wd = jnp.transpose(p['wd'][:, :, 0])   # (Cin, Cout)
        wd = jnp.pad(wd, ((0, Cp - Cin), (0, Coutp - Cout))).astype(jnp.bfloat16)
        bd = jnp.pad(p['bd'], (0, Coutp - Cout))[None, :].astype(jnp.float32)
    else:
        wd, bd = None, None
    return w1s, b1, w2s, b2, wd, bd


def tcn_forward(x_nct, params, kernel_size, activation='relu', only_last=True):
    """x_nct: (n_batch, feature_dim, time_step) — PyTorch NCT layout."""
    B, C0, T = x_nct.shape
    L = len(params)
    c_last = params[-1]['v1'].shape[0]

    x = jnp.transpose(x_nct, (0, 2, 1)).astype(jnp.float32)   # (B, T, C0)
    Cp0 = _round_up(C0, 128)
    if Cp0 != C0:           # lane-dense channel pad; padded channels stay zero
        x = jnp.pad(x, ((0, 0), (0, 0), (0, Cp0 - C0)))

    if only_last:
        # need[i] = trailing output timesteps required from layer i (causal net).
        need = [0] * L
        need[L - 1] = 1
        for i in range(L - 1, 0, -1):
            need[i - 1] = need[i] + 2 * (kernel_size - 1) * (2 ** i)

    for i, p in enumerate(params):
        dilation = 2 ** i
        if only_last:
            pad_i = (kernel_size - 1) * dilation
            t_need = min(x.shape[1], _round_up(need[i] + 2 * pad_i, 8))
            if t_need < x.shape[1]:
                x = x[:, x.shape[1] - t_need:, :]   # receptive-field tail only (exact)
        x = temporal_block(x, _prep_block_params(p), dilation, activation)

    if only_last:
        return x[:, -1, :c_last]                        # (n_batch, feature_dim)
    return jnp.transpose(x[:, :, :c_last], (0, 2, 1))   # (n_batch, feature_dim, time_step)


# --------------------------- pure-JAX reference ------------------------------

def _ref_tcn(x_nct, params, kernel_size, activation='relu', only_last=True):
    def causal_conv(x, w, b, dilation):
        pad = (kernel_size - 1) * dilation
        y = jax.lax.conv_general_dilated(
            x, w, window_strides=(1,), padding=[(pad, pad)],
            rhs_dilation=(dilation,), dimension_numbers=('NCH', 'OIH', 'NCH'))
        y = y[:, :, :x.shape[2]]               # Chomp1d
        return y + b[None, :, None]

    out = x_nct
    for i, p in enumerate(params):
        dilation = 2 ** i
        w1 = _wn_effective(p['v1'], p['g1'])
        w2 = _wn_effective(p['v2'], p['g2'])
        h = _act(causal_conv(out, w1, p['b1'], dilation), activation)
        h = _act(causal_conv(h, w2, p['b2'], dilation), activation)
        if p['wd'] is not None:
            res = jax.lax.conv_general_dilated(
                out, p['wd'], window_strides=(1,), padding=[(0, 0)],
                dimension_numbers=('NCH', 'OIH', 'NCH')) + p['bd'][None, :, None]
        else:
            res = out
        out = _act(h + res, activation)
    return out[:, :, -1] if only_last else out


if __name__ == "__main__":
    key = jax.random.PRNGKey(0)
    B, num_inputs, T = 2, 4, 16
    num_channels = [8, 8]      # layer 0 has a 1x1 downsample (4 != 8), layer 1 identity residual
    kernel_size = 2

    key, kx, kp = jax.random.split(key, 3)
    x = jax.random.normal(kx, (B, num_inputs, T), jnp.float32)   # (n_batch, feature_dim, time_step)
    params = init_tcn_params(kp, num_inputs, num_channels, kernel_size)

    y = tcn_forward(x, params, kernel_size, activation='relu', only_last=True)
    y = jax.block_until_ready(y)

    y_ref = _ref_tcn(x, params, kernel_size, activation='relu', only_last=True)
    assert y.shape == (B, num_channels[-1]), y.shape
    # bf16 matmul operands (f32 accumulation) vs. the pure-f32 reference.
    np.testing.assert_allclose(np.asarray(y), np.asarray(y_ref), rtol=3e-2, atol=3e-3)
    print("KERNEL_OK")
</pallas_src>

<mosaic_0001>
module attributes {stable_mosaic.version = 11 : i64} {
  func.func @kernel(%arg0: i32, %arg1: memref<1x8x128xf32, #tpu.memory_space<vmem>>, %arg2: memref<256x128xbf16, #tpu.memory_space<vmem>>, %arg3: memref<1x128xf32, #tpu.memory_space<vmem>>, %arg4: memref<256x128xbf16, #tpu.memory_space<vmem>>, %arg5: memref<1x128xf32, #tpu.memory_space<vmem>>, %arg6: memref<128x128xbf16, #tpu.memory_space<vmem>>, %arg7: memref<1x128xf32, #tpu.memory_space<vmem>>, %arg8: memref<1x8x128xf32, #tpu.memory_space<vmem>>, %arg9: memref<16x128xbf16, #tpu.memory_space<vmem>>, %arg10: memref<16x128xbf16, #tpu.memory_space<vmem>>) attributes {dimension_semantics = [#tpu.dimension_semantics<parallel>], iteration_bounds = array<i64: 2>, scalar_prefetch = 0 : i64, scratch_operands = 2 : i64, tpu.core_type = #tpu.core_type<tc>, window_params = [{transform_indices = @transform_0, window_bounds = array<i64: 1, 8, 128>}, {pipeline_mode = #tpu.pipeline_mode<synchronous>, transform_indices = @transform_1, window_bounds = array<i64: 256, 128>}, {pipeline_mode = #tpu.pipeline_mode<synchronous>, transform_indices = @transform_2, window_bounds = array<i64: 1, 128>}, {pipeline_mode = #tpu.pipeline_mode<synchronous>, transform_indices = @transform_3, window_bounds = array<i64: 256, 128>}, {pipeline_mode = #tpu.pipeline_mode<synchronous>, transform_indices = @transform_4, window_bounds = array<i64: 1, 128>}, {pipeline_mode = #tpu.pipeline_mode<synchronous>, transform_indices = @transform_5, window_bounds = array<i64: 128, 128>}, {pipeline_mode = #tpu.pipeline_mode<synchronous>, transform_indices = @transform_6, window_bounds = array<i64: 1, 128>}, {transform_indices = @transform_7, window_bounds = array<i64: 1, 8, 128>}]} {
    %c0 = arith.constant 0 : index
    %c0_0 = arith.constant 0 : index
    %c0_1 = arith.constant 0 : index
    %0 = vector.load %arg1[%c0, %c0_0, %c0_1] : memref<1x8x128xf32, #tpu.memory_space<vmem>>, vector<1x8x128xf32>
    %1 = vector.shape_cast %0 : vector<1x8x128xf32> to vector<8x128xf32>
    %2 = arith.truncf %1 : vector<8x128xf32> to vector<8x128xbf16>
    %cst = arith.constant 0.000000e+00 : bf16
    %3 = vector.broadcast %cst : bf16 to vector<8x128xbf16>
    %c0_2 = arith.constant 0 : index
    %c0_3 = arith.constant 0 : index
    %4 = vector.load %arg9[%c0_2, %c0_3] : memref<16x128xbf16, #tpu.memory_space<vmem>>, vector<8x128xbf16>
    tpu.vector_store %arg9[%c0_2, %c0_3], %3 {strides = array<i32>} : memref<16x128xbf16, #tpu.memory_space<vmem>>, vector<8x128xbf16>,
    %cst_4 = arith.constant 0.000000e+00 : bf16
    %5 = vector.broadcast %cst_4 : bf16 to vector<8x128xbf16>
    %c0_5 = arith.constant 0 : index
    %c0_6 = arith.constant 0 : index
    %6 = vector.load %arg10[%c0_5, %c0_6] : memref<16x128xbf16, #tpu.memory_space<vmem>>, vector<8x128xbf16>
    tpu.vector_store %arg10[%c0_5, %c0_6], %5 {strides = array<i32>} : memref<16x128xbf16, #tpu.memory_space<vmem>>, vector<8x128xbf16>,
    %c8 = arith.constant 8 : index
    %c0_7 = arith.constant 0 : index
    %7 = vector.load %arg9[%c8, %c0_7] : memref<16x128xbf16, #tpu.memory_space<vmem>>, vector<8x128xbf16>
    tpu.vector_store %arg9[%c8, %c0_7], %2 {strides = array<i32>} : memref<16x128xbf16, #tpu.memory_space<vmem>>, vector<8x128xbf16>,
    %c7 = arith.constant 7 : index
    %c0_8 = arith.constant 0 : index
    %8 = vector.load %arg9[%c7, %c0_8] : memref<16x128xbf16, #tpu.memory_space<vmem>>, vector<8x128xbf16>
    %c8_9 = arith.constant 8 : index
    %c0_10 = arith.constant 0 : index
    %9 = vector.load %arg9[%c8_9, %c0_10] : memref<16x128xbf16, #tpu.memory_space<vmem>>, vector<8x128xbf16>
    %10 = tpu.concatenate %8, %9 in 1 : vector<8x128xbf16>, vector<8x128xbf16> -> vector<8x256xbf16>
    %c0_11 = arith.constant 0 : index
    %c0_12 = arith.constant 0 : index
    %11 = vector.load %arg2[%c0_11, %c0_12] : memref<256x128xbf16, #tpu.memory_space<vmem>>, vector<256x128xbf16>
    %cst_13 = arith.constant dense<0.000000e+00> : vector<8x128xf32>
    %12 = tpu.matmul %10, %11, %cst_13 {dimension_numbers = #tpu.dot_dimension_numbers<[1], [0], [0], [1], [0, 0, 1, 1], [], []>} : vector<8x256xbf16>, vector<256x128xbf16>, vector<8x128xf32> -> vector<8x128xf32>
    %c0_14 = arith.constant 0 : index
    %c0_15 = arith.constant 0 : index
    %13 = vector.load %arg3[%c0_14, %c0_15] : memref<1x128xf32, #tpu.memory_space<vmem>>, vector<1x128xf32>
    %14 = vector.broadcast %13 : vector<1x128xf32> to vector<8x128xf32>
    %15 = arith.addf %12, %14 : vector<8x128xf32>
    %cst_16 = arith.constant 0.000000e+00 : f32
    %16 = vector.broadcast %cst_16 : f32 to vector<8x128xf32>
    %17 = arith.maximumf %15, %16 : vector<8x128xf32>
    %18 = arith.truncf %17 : vector<8x128xf32> to vector<8x128xbf16>
    %c8_17 = arith.constant 8 : index
    %c0_18 = arith.constant 0 : index
    %19 = vector.load %arg10[%c8_17, %c0_18] : memref<16x128xbf16, #tpu.memory_space<vmem>>, vector<8x128xbf16>
    tpu.vector_store %arg10[%c8_17, %c0_18], %18 {strides = array<i32>} : memref<16x128xbf16, #tpu.memory_space<vmem>>, vector<8x128xbf16>,
    %c7_19 = arith.constant 7 : index
    %c0_20 = arith.constant 0 : index
    %20 = vector.load %arg10[%c7_19, %c0_20] : memref<16x128xbf16, #tpu.memory_space<vmem>>, vector<8x128xbf16>
    %c8_21 = arith.constant 8 : index
    %c0_22 = arith.constant 0 : index
    %21 = vector.load %arg10[%c8_21, %c0_22] : memref<16x128xbf16, #tpu.memory_space<vmem>>, vector<8x128xbf16>
    %22 = tpu.concatenate %20, %21 in 1 : vector<8x128xbf16>, vector<8x128xbf16> -> vector<8x256xbf16>
    %c0_23 = arith.constant 0 : index
    %c0_24 = arith.constant 0 : index
    %23 = vector.load %arg4[%c0_23, %c0_24] : memref<256x128xbf16, #tpu.memory_space<vmem>>, vector<256x128xbf16>
    %cst_25 = arith.constant dense<0.000000e+00> : vector<8x128xf32>
    %24 = tpu.matmul %22, %23, %cst_25 {dimension_numbers = #tpu.dot_dimension_numbers<[1], [0], [0], [1], [0, 0, 1, 1], [], []>} : vector<8x256xbf16>, vector<256x128xbf16>, vector<8x128xf32> -> vector<8x128xf32>
    %c0_26 = arith.constant 0 : index
    %c0_27 = arith.constant 0 : index
    %25 = vector.load %arg5[%c0_26, %c0_27] : memref<1x128xf32, #tpu.memory_space<vmem>>, vector<1x128xf32>
    %26 = vector.broadcast %25 : vector<1x128xf32> to vector<8x128xf32>
    %27 = arith.addf %24, %26 : vector<8x128xf32>
    %cst_28 = arith.constant 0.000000e+00 : f32
    %28 = vector.broadcast %cst_28 : f32 to vector<8x128xf32>
    %29 = arith.maximumf %27, %28 : vector<8x128xf32>
    %c0_29 = arith.constant 0 : index
    %c0_30 = arith.constant 0 : index
    %30 = vector.load %arg6[%c0_29, %c0_30] : memref<128x128xbf16, #tpu.memory_space<vmem>>, vector<128x128xbf16>
    %cst_31 = arith.constant dense<0.000000e+00> : vector<8x128xf32>
    %31 = tpu.matmul %2, %30, %cst_31 {dimension_numbers = #tpu.dot_dimension_numbers<[1], [0], [0], [1], [0, 0, 1, 1], [], []>} : vector<8x128xbf16>, vector<128x128xbf16>, vector<8x128xf32> -> vector<8x128xf32>
    %c0_32 = arith.constant 0 : index
    %c0_33 = arith.constant 0 : index
    %32 = vector.load %arg7[%c0_32, %c0_33] : memref<1x128xf32, #tpu.memory_space<vmem>>, vector<1x128xf32>
    %33 = vector.broadcast %32 : vector<1x128xf32> to vector<8x128xf32>
    %34 = arith.addf %31, %33 : vector<8x128xf32>
    %35 = arith.addf %29, %34 : vector<8x128xf32>
    %cst_34 = arith.constant 0.000000e+00 : f32
    %36 = vector.broadcast %cst_34 : f32 to vector<8x128xf32>
    %37 = arith.maximumf %35, %36 : vector<8x128xf32>
    %c0_35 = arith.constant 0 : index
    %c0_36 = arith.constant 0 : index
    %c0_37 = arith.constant 0 : index
    %38 = vector.load %arg8[%c0_35, %c0_36, %c0_37] : memref<1x8x128xf32, #tpu.memory_space<vmem>>, vector<1x8x128xf32>
    %39 = vector.shape_cast %38 : vector<1x8x128xf32> to vector<8x128xf32>
    %40 = vector.shape_cast %37 : vector<8x128xf32> to vector<1x8x128xf32>
    tpu.vector_store %arg8[%c0_35, %c0_36, %c0_37], %40 {strides = array<i32>} : memref<1x8x128xf32, #tpu.memory_space<vmem>>, vector<1x8x128xf32>,
    return
  }
  func.func @transform_0(%arg0: i32) -> (i32, i32, i32) {
    %c0_i32 = arith.constant 0 : i32
    %c0_i32_0 = arith.constant 0 : i32
    %c0_i32_1 = arith.constant 0 : i32
    return %arg0, %c0_i32, %c0_i32_0 : i32, i32, i32
  }
  func.func @transform_1(%arg0: i32) -> (i32, i32) {
    %c0_i32 = arith.constant 0 : i32
    %c0_i32_0 = arith.constant 0 : i32
    %c0_i32_1 = arith.constant 0 : i32
    return %c0_i32, %c0_i32_0 : i32, i32
  }
  func.func @transform_2(%arg0: i32) -> (i32, i32) {
    %c0_i32 = arith.constant 0 : i32
    %c0_i32_0 = arith.constant 0 : i32
    %c0_i32_1 = arith.constant 0 : i32
    return %c0_i32, %c0_i32_0 : i32, i32
  }
  func.func @transform_3(%arg0: i32) -> (i32, i32) {
    %c0_i32 = arith.constant 0 : i32
    %c0_i32_0 = arith.constant 0 : i32
    %c0_i32_1 = arith.constant 0 : i32
    return %c0_i32, %c0_i32_0 : i32, i32
  }
  func.func @transform_4(%arg0: i32) -> (i32, i32) {
    %c0_i32 = arith.constant 0 : i32
    %c0_i32_0 = arith.constant 0 : i32
    %c0_i32_1 = arith.constant 0 : i32
    return %c0_i32, %c0_i32_0 : i32, i32
  }
  func.func @transform_5(%arg0: i32) -> (i32, i32) {
    %c0_i32 = arith.constant 0 : i32
    %c0_i32_0 = arith.constant 0 : i32
    %c0_i32_1 = arith.constant 0 : i32
    return %c0_i32, %c0_i32_0 : i32, i32
  }
  func.func @transform_6(%arg0: i32) -> (i32, i32) {
    %c0_i32 = arith.constant 0 : i32
    %c0_i32_0 = arith.constant 0 : i32
    %c0_i32_1 = arith.constant 0 : i32
    return %c0_i32, %c0_i32_0 : i32, i32
  }
  func.func @transform_7(%arg0: i32) -> (i32, i32, i32) {
    %c0_i32 = arith.constant 0 : i32
    %c0_i32_0 = arith.constant 0 : i32
    %c0_i32_1 = arith.constant 0 : i32
    return %arg0, %c0_i32, %c0_i32_0 : i32, i32, i32
  }
}

</mosaic_0001>

<bundles_post_ra>
// kernel: tpu_custom_call.1
= control target key start
LH: loop header
LB: loop body
LE: loop exit
PB: predicated region body
PF: predicated region fallthrough
CT: control target
= control target key end

     0   :  { %12 = vsyncpa [#allocation5], 0  ;;  %s1761_s0 = inlined_call_operand.hbm [shape: f32[2,8,128], index: 0, kind: input, shape index: {}]   ;;  %s1762_s1 = inlined_call_operand.hbm [shape: bf16[256,128], index: 1, kind: input, shape index: {}]   ;;  %s1763_s2 = inlined_call_operand.vmem [shape: f32[1,128], index: 2, kind: input, shape index: {}]   ;;  %s1764_s3 = inlined_call_operand.hbm [shape: bf16[256,128], index: 3, kind: input, shape index: {}]   ;;  %s1765_s4 = inlined_call_operand.vmem [shape: f32[1,128], index: 4, kind: input, shape index: {}]   ;;  %s1766_s5 = inlined_call_operand.hbm [shape: bf16[128,128], index: 5, kind: input, shape index: {}]   ;;  %s1767_s6 = inlined_call_operand.vmem [shape: f32[1,128], index: 6, kind: input, shape index: {}]   ;;  %s1768_s7 = inlined_call_operand.hbm [shape: f32[2,8,128], index: 7, kind: output, shape index: {}]  }
   0x1   :  { %14 = vsyncpa [#allocation5 + $0x1], 0 }
   0x2   :  { %15 = vsyncpa [#allocation8], 0 }
   0x3   :  { %16 = vsyncpa [#allocation11], 0 }
   0x4   :  { %17 = vsyncpa [#allocation6], 0 }
   0x5   :  { %19 = vsyncpa [#allocation6 + $0x1], 0  ;;  %s1481_s24 = smov 0   ;;  %s1483_s25 = smov 0  }
   0x6   :  { %s1485_s26 = smov 0   ;;  %s1487_s27 = smov 0  }
   0x7 LB: > { %s1502_s28 = sadd.s32 4294967295, %s1429_s27   ;;  %s985_s29 = sadd.s32 4294967294, %s1429_s27   ;;  %s1429_s27 = sphi %s1487_s27, %s1794_s27   ;;  %s1425_s26 = sphi %s1485_s26, %s1793_s26   ;;  %s1421_s25 = sphi %s1483_s25, %s1792_s25   ;;  %s1417_s24 = sphi %s1481_s24, %s1791_s24  }
   0x8   : > { %p45_p0 = scmp.ne.s32.totalorder %s1421_s25, %s1417_s24  ;;  %p1769_p1 = scmp.eq.s32.totalorder %s1502_s28, 0 }
   0x9   : > { %p201_p3 = scmp.eq.s32.totalorder %s985_s29, 1  ;;  %p986_p5 = scmp.ge.s32.totalorder %s1429_s27, 1 }
   0xa   : > { %p1511_p4 = por %p1769_p1, %p45_p0  ;;  %p208_p7 = scmp.lt.s32.totalorder %s1429_s27, 3 }
   0xb   : > { %p1516_p6 = por %p201_p3, %p45_p0  ;;  %s1431_s10 = smov [#allocation7]  }
   0xc   : > { %s1773_s30 = scalar_select %p1511_p4, 1, 0 }
   0xd   : > { %s1774_s8 = scalar_select %p1516_p6, 1, 0 }
   0xe   : > { %p1521_p8 = pnand %p986_p5, %p208_p7  ;;  %s220_s11 = sshll.u32 %s1431_s10, 4  ;;  %s1525_s11 = int_to_ptr.vmem [resolvable:$true] %s220_s11 }
   0xf   : > { %1775 = sst [smem:[#allocation17_spill]] %s1774_s8  ;;  %s1432_s13 = smov [#allocation9]  }
  0x10   : > { %s1776_s9 = scalar_select %p1521_p8, 1, 0 }
  0x11   : > { %p1135_p9 = pneg %p1521_p8  ;;  %s236_s14 = sshll.u32 %s1432_s13, 4  ;;  %s1536_s14 = int_to_ptr.vmem [resolvable:$true] %s236_s14 }
  0x12   : > { %s1433_s15 = smov [#allocation10]   ;;  %s1241_s19 = scalar_lea.hbm %s1762_s1, 2048 }
  0x13   : > { %p1532_p11 = pnand %p1135_p9, %p1769_p1  ;;  %s1538_s16 = sshll.u32 %s1433_s15, 4  ;;  %s253_s16 = int_to_ptr.vmem [resolvable:$true] %s1538_s16 }
  0x14   : > { %p1242_p12 = scmp.ne.s32.totalorder %s1762_s1, %s1241_s19  ;;  %p1248_p5 = scmp.lt.u32.totalorder %s1241_s19, %s1762_s1 }
  0x15   : > { %p1548_p13 = pneg %p1532_p11 }
  0x17   : > { %p1244_p0 = pnand %p1548_p13, %p1242_p12 }
  0x19   : > { %p1245_p3 = pneg %p1244_p0 }
  0x1b   : > { %p1250_p7 = pnand %p1248_p5, %p1245_p3 }
  0x1d   : > { %1253 = shalt.err (!%p1250_p7)
}
  0x1e   : > { %s1254_s10 = scalar_lea.vmem %s1525_s11, 2048  ;;  %p1262_p2 = scmp.lt.s32.totalorder %s1525_s11, %s1525_s11 }
  0x1f   : > { %p1255_p9 = scmp.ne.s32.totalorder %s1525_s11, %s1254_s10  ;;  %p1263_p6 = scmp.lt.s32.totalorder %s1254_s10, %s1254_s10 }
  0x21   : > { %p1257_p10 = pnand %p1255_p9, %p1548_p13  ;;  %p1264_p12 = por %p1263_p6, %p1262_p2 }
  0x23   : > { %p1258_p1 = pneg %p1257_p10 }
  0x25   : > { %p1265_p0 = pnand %p1264_p12, %p1258_p1 }
  0x27   : > { %1268 = shalt.err (!%p1265_p0)
}
  0x28   : > { %s1434_s13 = smov 64   ;;  %s1435_s15 = smov 4  }
  0x29   : > { %1138 = dma.hbm_to_vmem [thread:$0]  (!%p1532_p11), %s1762_s1, 2048, %s1525_s11, [#allocation8], %s1434_s13, %s1434_s13, %s1435_s15  }
  0x2a   : > { %s1269_s21 = scalar_lea.hbm %s1764_s3, 2048 }
  0x2b   : > { %p1270_p1 = scmp.ne.s32.totalorder %s1764_s3, %s1269_s21  ;;  %p1276_p10 = scmp.lt.u32.totalorder %s1269_s21, %s1764_s3 }
  0x2d   : > { %p1272_p2 = pnand %p1270_p1, %p1548_p13 }
  0x2f   : > { %p1273_p6 = pneg %p1272_p2 }
  0x31   : > { %p1278_p3 = pnand %p1276_p10, %p1273_p6 }
  0x33   : > { %1281 = shalt.err (!%p1278_p3)
}
  0x34   : > { %s1282_s11 = scalar_lea.vmem %s1536_s14, 2048  ;;  %p1290_p12 = scmp.lt.s32.totalorder %s1536_s14, %s1536_s14 }
  0x35   : > { %p1283_p5 = scmp.ne.s32.totalorder %s1536_s14, %s1282_s11  ;;  %p1291_p0 = scmp.lt.s32.totalorder %s1282_s11, %s1282_s11 }
  0x37   : > { %p1285_p7 = pnand %p1283_p5, %p1548_p13  ;;  %p1292_p1 = por %p1291_p0, %p1290_p12 }
  0x39   : > { %p1286_p9 = pneg %p1285_p7 }
  0x3b   : > { %p1293_p2 = pnand %p1292_p1, %p1286_p9 }
  0x3d   : > { %1296 = shalt.err (!%p1293_p2)
}
  0x3e   : > { %1141 = dma.hbm_to_vmem [thread:$0]  (!%p1532_p11), %s1764_s3, 2048, %s1536_s14, [#allocation8], %s1434_s13, %s1434_s13, %s1435_s15  }
  0x3f   : > { %s1297_s20 = scalar_lea.hbm %s1766_s5, 1024 }
  0x40   : > { %p1298_p6 = scmp.ne.s32.totalorder %s1766_s5, %s1297_s20  ;;  %p1304_p5 = scmp.lt.u32.totalorder %s1297_s20, %s1766_s5 }
  0x42   : > { %p1300_p10 = pnand %p1298_p6, %p1548_p13 }
  0x44   : > { %p1301_p3 = pneg %p1300_p10 }
  0x46   : > { %p1306_p7 = pnand %p1304_p5, %p1301_p3 }
  0x48   : > { %1309 = shalt.err (!%p1306_p7)
}
  0x49   : > { %s1310_s11 = scalar_lea.vmem %s253_s16, 1024  ;;  %p1318_p1 = scmp.lt.s32.totalorder %s253_s16, %s253_s16 }
  0x4a   : > { %p1311_p9 = scmp.ne.s32.totalorder %s253_s16, %s1310_s11  ;;  %p1319_p2 = scmp.lt.s32.totalorder %s1310_s11, %s1310_s11 }
  0x4c   : > { %p1313_p12 = pnand %p1311_p9, %p1548_p13  ;;  %p1320_p4 = por %p1319_p2, %p1318_p1 }
  0x4e   : > { %p1314_p0 = pneg %p1313_p12 }
  0x50   : > { %p1321_p8 = pnand %p1320_p4, %p1314_p0 }
  0x52   : > { %1324 = shalt.err (!%p1321_p8)
}
  0x53   : > { %1144 = dma.hbm_to_vmem [thread:$0]  (!%p1532_p11), %s1766_s5, 1024, %s253_s16, [#allocation11], %s1434_s13, %s1434_s13, %s1435_s15  }
  0x54   : > { %s1621_s22 = sadd.s32 1, %s1429_s27   ;;  %s32_s17 = sadd.s32 1, %s1425_s26 }
  0x55   : > { %s29_s12 = ssub.s32 %s1429_s27, %s1621_s22  ;;  %p39_p8 = scmp.ne.s32.totalorder %s1425_s26, %s1421_s25 }
  0x56   : > { %p30_p4 = scmp.eq.s32.totalorder %s29_s12, 0  ;;  %p40_p13 = scmp.eq.s32.totalorder %s1429_s27, 0 }
  0x57   : > { %p1156_p6 = scmp.lt.s32.totalorder %s1429_s27, 2  ;;  %p1779_p3 = scmp.eq.s32.totalorder %s1502_s28, 1 }
  0x58   : > { %s1631_s18 = scalar_select %p30_p4, %s1425_s26, %s32_s17  }
  0x59   : > { %p41_p10 = por %p40_p13, %p39_p8  ;;  %p1635_p5 = por %p1779_p3, %p39_p8 }
  0x5a   : > { %s269_s20 = sand.u32 1, %s1425_s26   ;;  %s992_s21 = sshll.u32 %s1429_s27, 7 }
  0x5b   : > { %s991_s16 = sshll.u32 %s269_s20, 3  ;;  %s1644_s23 = scalar_lea.hbm %s1761_s0, %s992_s21 }
  0x5c   : > { %s273_s29 = scalar_lea.vmem [#allocation4], %s991_s16  ;;  %p1646_p11 = pnand %p1156_p6, %p41_p10 }
  0x5d   : > { %s280_s10 = sshll.u32 %s273_s29, 4  ;;  %s270_s14 = scalar_lea.sflag [#allocation5], %s269_s20  ;;  %s1650_s10 = int_to_ptr.vmem [resolvable:$true] %s280_s10 }
  0x5e   : > { %s1325_s8 = scalar_lea.hbm %s1644_s23, 128  ;;  %p1327_p9 = pneg %p1646_p11 }
  0x5f   : > { %p1326_p7 = scmp.ne.s32.totalorder %s1644_s23, %s1325_s8  ;;  %s1330_s21 = scalar_lea.hbm %s1761_s0, 256 }
  0x60   : > { %p1331_p1 = scmp.lt.u32.totalorder %s1644_s23, %s1761_s0  ;;  %p1332_p2 = scmp.lt.u32.totalorder %s1330_s21, %s1325_s8 }
  0x61   : > { %p1328_p12 = pnand %p1327_p9, %p1326_p7  ;;  %p1334_p8 = scmp.lt.u32.totalorder %s1325_s8, %s1644_s23 }
  0x62   : > { %p1333_p4 = por %p1332_p2, %p1331_p1 }
  0x63   : > { %p1329_p0 = pneg %p1328_p12 }
  0x64   : > { %p1335_p13 = por %p1334_p8, %p1333_p4 }
  0x66   : > { %p1336_p6 = pnand %p1335_p13, %p1329_p0 }
  0x68   : > { %1339 = shalt.err (!%p1336_p6)
}
  0x69   : > { %s1340_s20 = scalar_lea.vmem %s1650_s10, 128  ;;  %s1436_s15 = smov [#allocation4]  }
  0x6a   : > { %p1341_p10 = scmp.ne.s32.totalorder %s1650_s10, %s1340_s20  ;;  %s1345_s29 = sshll.u32 %s1436_s15, 4  ;;  %s1346_s29 = int_to_ptr.vmem [resolvable:$false] %s1345_s29 }
  0x6b   : > { %s1347_s12 = scalar_lea.vmem %s1346_s29, 256  ;;  %p1348_p12 = scmp.lt.s32.totalorder %s1650_s10, %s1346_s29 }
  0x6c   : > { %p1343_p3 = pnand %p1341_p10, %p1327_p9  ;;  %p1349_p1 = scmp.lt.s32.totalorder %s1347_s12, %s1340_s20 }
  0x6e   : > { %p1344_p7 = pneg %p1343_p3  ;;  %p1350_p2 = por %p1349_p1, %p1348_p12 }
  0x70   : > { %p1351_p4 = pnand %p1350_p2, %p1344_p7 }
  0x72   : > { %1354 = shalt.err (!%p1351_p4)
}
  0x73   : > { %1148 = dma.hbm_to_vmem [thread:$0]  (!%p1646_p11), %s1644_s23, 128, %s1650_s10, %s270_s14  }
  0x74   : > { %p1782_p0 = scmp.ne.s32.totalorder %s1776_s9, 0 }
  0x75   : > { %s1680_s8 = sand.u32 (!%p1782_p0), 1, %s1421_s25   ;;  %p1783_p9 = scmp.ne.s32.totalorder (!%p1782_p0), %s1773_s30, 0 }
  0x76   : > { %289 = sbr.rel (%p1782_p0) target bundleno = 647 (0x287), region = 48  ;;  %s994_s17 = sshll.u32 (!%p1782_p0), %s1680_s8, 3 }
  0x77   : > { %s292_s21 = scalar_lea.sflag (!%p1782_p0), [#allocation5], %s1680_s8  ;;  %s295_s16 = scalar_lea.vmem (!%p1782_p0), [#allocation4], %s994_s17 }
  0x7d   : > { %1400 = dma.done.wait (%p1783_p9), %s292_s21, 128  }
  0x7e   : > { %1402 = vsyncadd (%p1783_p9), %s292_s21, 4294967168  ;;  %p1784_p11 = scmp.eq.s32.totalorder %s1502_s28, 0 }
  0x80   : > { %1404 = dma.done.wait (%p1784_p11), [#allocation8], 4096   ;;  %p1785_p8 = pmov %p1784_p11 }
  0x82   : > { %1406 = vsyncadd (%p1785_p8), [#allocation8], 4294963200  ;;  %p1786_p13 = pmov %p1785_p8 }
  0x83   : > { %p1787_p6 = pmov %p1785_p8 }
  0x84   : > { %1408 = dma.done.wait (%p1786_p13), [#allocation11], 1024  }
  0x85   : > { %1410 = vsyncadd (%p1787_p6), [#allocation11], 4294966272  ;;  %v1437_v0 = vmov 0   ;;  %v1201_v1 = vld [vmem:[#allocation7 + $0x40] sm:$0xff]   ;;  %v1203_v3 = vld [vmem:[#allocation7 + $0x48] sm:$0xff]   ;;  %v1438_v39 = vmov 0.0  }
  0x86   : > { %341 = vst [vmem:[#allocation2] sm:$0xf] %v1437_v0  ;;  %342 = vst [vmem:[#allocation3] sm:$0xf] %v1437_v0  ;;  %v1202_v2 = vld [vmem:[#allocation7] sm:$0xff]   ;;  %1046 = vmatprep.subr.bf16.mxu0 %v1201_v1  ;;  %v1204_v4 = vld [vmem:[#allocation7 + $0x8] sm:$0xff]  }
  0x87   : > { %1047 = vmatpush3.bf16.msra.mxu0 %v1202_v2  ;;  %v1205_v5 = vld [vmem:[#allocation7 + $0x50] sm:$0xff]   ;;  %v1207_v7 = vld [vmem:[#allocation7 + $0x58] sm:$0xff]   ;;  %v1209_v9 = vld [vmem:[#allocation7 + $0x60] sm:$0xff]   ;;  %vm1439_vm0 = vmmov 0   ;;  %s1043_s13 = sshll.u32 %s1502_s28, 7  ;;  %s337_s20 = scalar_lea.vmem [#allocation12], %s994_s17 }
  0x88   : > { %1048 = vmatprep.subr.bf16.mxu0 %v1203_v3  ;;  %v1206_v6 = vld [vmem:[#allocation7 + $0x10] sm:$0xff]   ;;  %v1208_v8 = vld [vmem:[#allocation7 + $0x18] sm:$0xff]   ;;  %v1210_v10 = vld [vmem:[#allocation7 + $0x20] sm:$0xff]   ;;  %s886_s15 = sshll.u32 %s337_s20, 4  ;;  %s1717_s21 = scalar_lea.hbm %s1768_s7, %s1043_s13  ;;  %s1719_s15 = int_to_ptr.vmem [resolvable:$true] %s886_s15 }
  0x89   : > { %v1211_v11 = vld [vmem:[#allocation7 + $0x68] sm:$0xff]   ;;  %v339_v12 = vld [vmem:[%s295_s16] sm:$0xff]  ;;  %v1217_v36 = vld [vmem:[#allocation9 + $0x40] sm:$0xff]   ;;  %s873_s16 = scalar_lea.sflag [#allocation6], %s1680_s8  ;;  %s1355_s30 = scalar_lea.vmem %s1719_s15, 128 }
  0x8a   : > { %v1212_v13 = vld [vmem:[#allocation7 + $0x28] sm:$0xff]   ;;  %v1698_v14 = vpack.c.bf16 %v339_v12, %v339_v12  ;;  %v1213_v15 = vld [vmem:[#allocation7 + $0x70] sm:$0xff]   ;;  %v1215_v18 = vld [vmem:[#allocation7 + $0x78] sm:$0xff]   ;;  %1068 = vmatprep.subr.bf16.mxu1 %v1217_v36  ;;  %p1356_p10 = scmp.ne.s32.totalorder %s1719_s15, %s1355_s30  ;;  %s1440_s28 = smov [#allocation12]  }
  0x8b   : > { %1049 = vmatpush3.bf16.msra.mxu0 %v1204_v4  ;;  %v1214_v17 = vld [vmem:[#allocation7 + $0x30] sm:$0xff]   ;;  %v1216_v19 = vld [vmem:[#allocation7 + $0x38] sm:$0xff]   ;;  %v1218_v37 = vld [vmem:[#allocation9] sm:$0xff]   ;;  %s1359_s17 = sshll.u32 %s1440_s28, 4  ;;  %s1360_s17 = int_to_ptr.vmem [resolvable:$false] %s1359_s17 }
  0x8c   : > { %1050 = vmatprep.subr.bf16.mxu0 %v1205_v5  ;;  %v344_v16 = vrot.slane %v1698_v14, 4  ;;  %1069 = vmatpush3.bf16.msra.mxu1 %v1218_v37  ;;  %v1219_v38 = vld [vmem:[#allocation10] sm:$0xff]   ;;  %v1220_v40 = vld [vmem:[#allocation9 + $0x48] sm:$0xff]   ;;  %v1223_v43 = vld [vmem:[#allocation9 + $0x50] sm:$0xff]   ;;  %p1357_p3 = pnand %p1356_p10, %p1635_p5  ;;  %s1361_s9 = scalar_lea.vmem %s1360_s17, 256 }
  0x8d   : > { %v1221_v41 = vld [vmem:[#allocation9 + $0x8] sm:$0xff]   ;;  %1070 = vmatprep.subr.bf16.mxu1 %v1220_v40  ;;  %v1224_v44 = vld [vmem:[#allocation9 + $0x10] sm:$0xff]   ;;  %v1226_v46 = vld [vmem:[#allocation9 + $0x58] sm:$0xff]   ;;  %p1362_p12 = scmp.lt.s32.totalorder %s1719_s15, %s1360_s17  ;;  %p1363_p1 = scmp.lt.s32.totalorder %s1361_s9, %s1355_s30 }
  0x8e   : > { %346 = vst [vmem:[#allocation2] sm:$0xf0] %v344_v16  ;;  %v1222_v42 = vld [vmem:[#allocation10 + $0x8] sm:$0xff]   ;;  %v1225_v45 = vld [vmem:[#allocation10 + $0x10] sm:$0xff]   ;;  %v1227_v47 = vld [vmem:[#allocation9 + $0x18] sm:$0xff]   ;;  %p1358_p7 = pneg %p1357_p3 }
  0x8f   : > { %1051 = vmatpush3.bf16.msra.mxu0 %v1206_v6  ;;  %v1228_v48 = vld [vmem:[#allocation10 + $0x18] sm:$0xff]   ;;  %v1229_v49 = vld [vmem:[#allocation9 + $0x60] sm:$0xff]   ;;  %v1232_v51 = vld [vmem:[#allocation9 + $0x68] sm:$0xff]   ;;  %p1364_p2 = por %p1363_p1, %p1362_p12 }
  0x90   : > { %1052 = vmatprep.subr.bf16.mxu0 %v1207_v7  ;;  %1071 = vmatpush3.bf16.msra.mxu1 %v1221_v41  ;;  %v1230_v50 = vld [vmem:[#allocation9 + $0x20] sm:$0xff]   ;;  %v1233_v53 = vld [vmem:[#allocation9 + $0x28] sm:$0xff]   ;;  %v1235_v54 = vld [vmem:[#allocation9 + $0x70] sm:$0xff]  }
  0x91   : > { %1072 = vmatprep.subr.bf16.mxu1 %v1223_v43  ;;  %v1231_v52 = vld [vmem:[#allocation10 + $0x20] sm:$0xff]   ;;  %v1234_v55 = vld [vmem:[#allocation10 + $0x28] sm:$0xff]   ;;  %v1236_v56 = vld [vmem:[#allocation9 + $0x30] sm:$0xff]   ;;  %p1365_p4 = pnand %p1364_p2, %p1358_p7 }
  0x92   : > { %v1238_v57 = vld [vmem:[#allocation9 + $0x78] sm:$0xff]   ;;  %v1237_v58 = vld [vmem:[#allocation10 + $0x30] sm:$0xff]   ;;  %v999_v62 = vld [vmem:[%s1763_s2] ss:$0 sm:$0xff] }
  0x93   : > { %1053 = vmatpush3.bf16.msra.mxu0 %v1208_v8  ;;  %v1239_v59 = vld [vmem:[#allocation9 + $0x38] sm:$0xff]  }
  0x94   : > { %1054 = vmatprep.subr.bf16.mxu0 %v1209_v9  ;;  %1073 = vmatpush3.bf16.msra.mxu1 %v1224_v44  ;;  %v1240_v60 = vld [vmem:[#allocation10 + $0x38] sm:$0xff]  }
  0x95   : > { %v348_v20 = vld [vmem:[#allocation2] sm:$0xf0]  ;;  %1074 = vmatprep.subr.bf16.mxu1 %v1226_v46 }
  0x96   : > { %v347_v21 = vld [vmem:[#allocation2] sm:$0xf8]  ;;  %v350_v22 = vshrl.u32 %v348_v20, 16  ;;  %v352_v23 = vshll.u32 %v348_v20, 16 }
  0x97   : > { %1055 = vmatpush3.bf16.msra.mxu0 %v1210_v10  ;;  %v396_v24 = vshrl.u32 %v347_v21, 16  ;;  %v399_v25 = vshll.u32 %v347_v21, 16 }
  0x98   : > { %1056 = vmatprep.subr.bf16.mxu0 %v1211_v11  ;;  %v354_v26 = vrot.slane %v352_v23, 1  ;;  %1075 = vmatpush3.bf16.msra.mxu1 %v1227_v47 }
  0x99   : > { %v398_v28 = vrot.slane %v396_v24, 3  ;;  %v401_v29 = vrot.slane %v399_v25, 4  ;;  %1076 = vmatprep.subr.bf16.mxu1 %v1229_v49 }
  0x9a   : > { %v355_v27 = vor.u32 %v354_v26, %v350_v22 }
  0x9b   : > { %1057 = vmatpush3.bf16.msra.mxu0 %v1212_v13  ;;  %v402_v34 = vor.u32 %v401_v29, %v398_v28  ;;  %v1016_v28 = vld [vmem:[%s1765_s4] ss:$0 sm:$0xff] }
  0x9c   : > { %1058 = vmatprep.subr.bf16.mxu0 %v1213_v15  ;;  %v404_v30 = vshrl.u32 %v355_v27, 16  ;;  %v407_v31 = vshll.u32 %v355_v27, 16  ;;  %1077 = vmatpush3.bf16.msra.mxu1 %v1230_v50 }
  0x9d   : > { %1078 = vmatprep.subr.bf16.mxu1 %v1232_v51 }
  0x9e   : > { %v406_v32 = vrot.slane %v404_v30, 3  ;;  %v409_v33 = vrot.slane %v407_v31, 4  ;;  %v1033_v30 = vld [vmem:[%s1767_s6] ss:$0 sm:$0xff] }
  0x9f   : > { %1059 = vmatpush3.bf16.msra.mxu0 %v1214_v17 }
  0xa0   : > { %1060 = vmatprep.subr.bf16.mxu0 %v1215_v18  ;;  %v410_v35 = vor.u32 %v409_v33, %v406_v32  ;;  %1079 = vmatpush3.bf16.msra.mxu1 %v1233_v53 }
  0xa1   : > { %1080 = vmatprep.subr.bf16.mxu1 %v1235_v54 }
  0xa2   : > { %541 = vmatprep.mubr.bf16.mxu0 %v410_v35 }
  0xa3   : > { %1061 = vmatpush3.bf16.msra.mxu0 %v1216_v19 }
  0xa4   : > { %1099 = vmatprep.subr.bf16.mxu0 %v1438_v39  ;;  %1081 = vmatpush3.bf16.msra.mxu1 %v1236_v56 }
  0xa5   : > { %1082 = vmatprep.subr.bf16.mxu1 %v1238_v57 }
  0xa6   : > { %542 = vmatmul.mubr.bf16.vlgmr.msra.gmra.mrb[0].mxu0 %v402_v34 }
  0xa7   : > { %1100 = vmatpush3.bf16.msra.mxu0 %v1219_v38  ;;  %1115 = vmatprep.mubr.msk.bf16.mxu0 %vm1439_vm0, %v1438_v39 }
  0xa8   : > { %1101 = vmatprep.subr.bf16.mxu0 %v1438_v39  ;;  %1083 = vmatpush3.bf16.msra.mxu1 %v1239_v59 }
  0xab   : > { %1102 = vmatpush3.bf16.msra.mxu0 %v1222_v42 }
  0xac   : > { %1103 = vmatprep.subr.bf16.mxu0 %v1438_v39 }
  0xaf   : > { %1104 = vmatpush3.bf16.msra.mxu0 %v1225_v45 }
  0xb0   : > { %1105 = vmatprep.subr.bf16.mxu0 %v1438_v39 }
  0xb3   : > { %1106 = vmatpush3.bf16.msra.mxu0 %v1228_v48 }
  0xb4   : > { %1107 = vmatprep.subr.bf16.mxu0 %v1438_v39 }
  0xb7   : > { %1108 = vmatpush3.bf16.msra.mxu0 %v1231_v52 }
  0xb8   : > { %1109 = vmatprep.subr.bf16.mxu0 %v1438_v39 }
  0xbb   : > { %1110 = vmatpush3.bf16.msra.mxu0 %v1234_v55 }
  0xbc   : > { %1111 = vmatprep.subr.bf16.mxu0 %v1438_v39 }
  0xbf   : > { %1112 = vmatpush3.bf16.msra.mxu0 %v1237_v58 }
  0xc0   : > { %1113 = vmatprep.subr.bf16.mxu0 %v1438_v39 }
  0xc3   : > { %1114 = vmatpush3.bf16.msra.mxu0 %v1240_v60 }
  0xc6   : > { %1116 = vmatmul.mubr.bf16.vlgmr.msra.gmra.mrb[4].mxu0 %v1698_v14 }
 0x179   : > { %v1062_v61 = vpop.f32.mrb[0].mxu0 }
 0x17a   : > { %v1063_v63 = vpop.f32.mrb[1].mxu0 }
 0x17b   : > { %v1064_v0 = vadd.f32 %v1063_v63, %v1062_v61  ;;  %v1065_v1 = vpop.f32.mrb[2].mxu0 }
 0x17c   : > { %v1066_v2 = vpop.f32.mrb[3].mxu0 }
 0x17d   : > { %v544_v3 = vadd.f32 %v1064_v0, %v999_v62 }
 0x17f   : > { %v549_v4 = vmax.f32 %v544_v3, 0.0 }
 0x181   : > { %v550_v5 = vpack.c.bf16 %v549_v4, %v549_v4 }
 0x183   : > { %v552_v6 = vrot.slane %v550_v5, 4 }
 0x185   : > { %554 = vst [vmem:[#allocation3] sm:$0xf0] %v552_v6 }
 0x18c   : > { %v556_v7 = vld [vmem:[#allocation3] sm:$0xf0] }
 0x18d   : > { %v560_v8 = vshll.u32 %v556_v7, 16  ;;  %v555_v9 = vld [vmem:[#allocation3] sm:$0xf8]  ;;  %v558_v10 = vshrl.u32 %v556_v7, 16 }
 0x18e   : > { %v604_v12 = vshrl.u32 %v555_v9, 16  ;;  %v607_v13 = vshll.u32 %v555_v9, 16 }
 0x18f   : > { %v562_v11 = vrot.slane %v560_v8, 1 }
 0x190   : > { %v606_v17 = vrot.slane %v604_v12, 3  ;;  %v609_v18 = vrot.slane %v607_v13, 4 }
 0x191   : > { %v563_v14 = vor.u32 %v562_v11, %v558_v10 }
 0x192   : > { %v610_v22 = vor.u32 %v609_v18, %v606_v17 }
 0x193   : > { %v612_v15 = vshrl.u32 %v563_v14, 16  ;;  %v615_v16 = vshll.u32 %v563_v14, 16 }
 0x195   : > { %v614_v19 = vrot.slane %v612_v15, 3  ;;  %v617_v20 = vrot.slane %v615_v16, 4 }
 0x197   : > { %v618_v21 = vor.u32 %v617_v20, %v614_v19 }
 0x199   : > { %749 = vmatprep.mubr.bf16.mxu1 %v618_v21  ;;  %v863_v23 = vpop.f32.mrb[4].mxu0 }
 0x19a   : > { %750 = vmatmul.mubr.bf16.vlgmr.msra.gmra.mrb[0].mxu1 %v610_v22  ;;  %v1117_v24 = vpop.f32.mrb[5].mxu0  ;;  %v864_v35 = vadd.f32 %v1033_v30, %v863_v23 }
 0x19b   : > { %v866_v25 = vpop.f32.mrb[6].mxu0 }
 0x19c   : > { %v1118_v26 = vpop.f32.mrb[7].mxu0 }
 0x26d   : > { %v1084_v27 = vpop.f32.mrb[0].mxu1 }
 0x26e   : > { %v1085_v29 = vpop.f32.mrb[1].mxu1 }
 0x26f   : > { %v1086_v31 = vadd.f32 %v1085_v29, %v1084_v27  ;;  %v1087_v32 = vpop.f32.mrb[2].mxu1 }
 0x270   : > { %v1088_v33 = vpop.f32.mrb[3].mxu1 }
 0x271   : > { %v752_v34 = vadd.f32 %v1086_v31, %v1016_v28 }
 0x273   : > { %v757_v36 = vmax.f32 %v752_v34, 0.0 }
 0x275   : > { %v869_v37 = vadd.f32 %v864_v35, %v757_v36 }
 0x277   : > { %v870_v38 = vmax.f32 %v869_v37, 0.0 }
 0x279   : > { %871 = vst [vmem:[%s337_s20] sm:$0xff] %v870_v38 }
 0x27a   : > { %1368 = shalt.err (!%p1365_p4)
}
 0x27b   : > { %s1369_s8 = scalar_lea.hbm %s1717_s21, 128  ;;  %s1373_s11 = scalar_lea.hbm %s1768_s7, 256 }
 0x27c   : > { %p1370_p0 = scmp.ne.s32.totalorder %s1717_s21, %s1369_s8  ;;  %p1374_p8 = scmp.lt.u32.totalorder %s1717_s21, %s1768_s7 }
 0x27d   : > { %p1375_p13 = scmp.lt.u32.totalorder %s1373_s11, %s1369_s8  ;;  %p1377_p10 = scmp.lt.u32.totalorder %s1369_s8, %s1717_s21 }
 0x27e   : > { %p1371_p9 = pnand %p1370_p0, %p1635_p5 }
 0x27f   : > { %p1376_p6 = por %p1375_p13, %p1374_p8 }
 0x280   : > { %p1372_p11 = pneg %p1371_p9 }
 0x281   : > { %p1378_p3 = por %p1377_p10, %p1376_p6 }
 0x283   : > { %p1379_p7 = pnand %p1378_p3, %p1372_p11 }
 0x285   : > { %1382 = shalt.err (!%p1379_p7)
}
 0x286   : > { %1133 = dma.vmem_to_hbm [thread:$0]  (%p1635_p5), %s1719_s15, 128, %s1717_s21, %s873_s16  }
 0x287 PF: > { %s1788_s20 = sld [smem:[#allocation17_spill]]  ;;  %s898_s29 = sand.u32 1, %s1417_s24  }
 0x288   : > { %p1790_p1 = scmp.ge.s32.totalorder %s1429_s27, 2  ;;  %s899_s12 = scalar_lea.sflag [#allocation6], %s898_s29 }
 0x28d   : > { %p1789_p12 = scmp.ne.s32.totalorder %s1788_s20, 0 }
 0x28f   : > { %p1150_p2 = pnand %p1790_p1, %p1789_p12 }
 0x291   : > { %1412 = dma.done.wait (!%p1150_p2), %s899_s12, 128  }
 0x292   : > { %1414 = vsyncadd (!%p1150_p2), %s899_s12, 4294967168  ;;  %p22_p4 = scmp.ge.s32.totalorder %s1621_s22, 4   ;;  %s1791_s24 = smov %s1421_s25 }
 0x293   : > { %s1792_s25 = smov %s1425_s26  ;;  %s1793_s26 = smov %s1631_s18 }
 0x294   : > { %s1794_s27 = smov %s1621_s22  ;;  %24 = sbr.rel (!%p22_p4) target bundleno = 7 (0x7), region = 105 }
 0x29b   :  { %904 = vsyncpa [#allocation5], 1 }
 0x29c   :  { %906 = vsyncpa [#allocation5 + $0x1], 1 }
 0x29d   :  { %907 = vsyncpa [#allocation8], 1 }
 0x29e   :  { %908 = vsyncpa [#allocation11], 1 }
 0x29f   :  { %909 = vsyncpa [#allocation6], 1 }
 0x2a0   :  { %911 = vsyncpa [#allocation6 + $0x1], 1 }

</bundles_post_ra>
